<compile_context>
chip_gen: v5e
topology: v5e:2x2
jax: 0.10.0
libtpu: 0.0.40
codegen_flags: <defaults>
</compile_context>

<pallas_src>
import functools

import jax
import jax.numpy as jnp
from jax.scipy.linalg import block_diag
from jax.experimental import pallas as pl
from jax.experimental.pallas import tpu as pltpu


def _round_up(x, m):
    return ((x + m - 1) // m) * m


def _silu(z):
    # silu(z) = z * sigmoid(z);  sigmoid(z) = 0.5*(tanh(z/2)+1) keeps it on the EUP.
    return 0.5 * z * (jnp.tanh(0.5 * z) + 1.0)


# ------------------------------------------------------------------ Pallas kernel
def _composition_kernel(x_ref, t_ref,
                        w1x_ref, w1t_ref, b1_ref,
                        w2_ref, b2_ref,
                        w3s_ref, b3s_ref,
                        w3e_ref, b3e_ref,
                        w3c_ref, b3c_ref,
                        expand_ref, b3stk_ref,
                        out_ref, scores_ref,
                        *, algebra, tau_summation, compute_dtype):
    cdt = compute_dtype
    f32 = jnp.float32

    x = x_ref[...].astype(cdt)                         # (bb, D)
    t = t_ref[...].astype(f32)                         # (bb, 1)

    # layer 1: lane-packed MXU matmul over all models + rank-1 timestep term on the VPU
    h1 = jnp.dot(x, w1x_ref[...], preferred_element_type=f32)
    h1 = _silu(h1 + t * w1t_ref[...] + b1_ref[...])    # (bb, MH_pad), f32

    # layer 2: block-diagonal packed W2
    h2 = jnp.dot(h1.astype(cdt), w2_ref[...], preferred_element_type=f32)
    h2 = _silu(h2 + b2_ref[...])                       # (bb, MH_pad), f32
    h2c = h2.astype(cdt)

    # per-model scores, lane-dense packed output (block-diagonal score head)
    scores = jnp.dot(h2c, w3s_ref[...], preferred_element_type=f32) + b3s_ref[...]
    scores_ref[...] = scores.astype(scores_ref.dtype)  # (bb, MD_pad)

    if algebra in ('product', 'negation'):
        # static coefficients are folded into w3c / b3c on the host
        result = jnp.dot(h2c, w3c_ref[...], preferred_element_type=f32) + b3c_ref[...]
    elif algebra == 'summation':
        # per-model energies (bb, M), softmax over models along the lane axis
        e = jnp.dot(h2c, w3e_ref[...], preferred_element_type=f32) + b3e_ref[...]
        z = -tau_summation * e
        z = z - jnp.max(z, axis=-1, keepdims=True)
        p = jnp.exp(z)
        w = p / jnp.sum(p, axis=-1, keepdims=True)      # (bb, M), f32
        # expand softmax weights to the packed hidden layout and fold into h2
        w_exp = jnp.dot(w, expand_ref[...], preferred_element_type=f32)   # (bb, MH_pad)
        h2w = (h2 * w_exp).astype(cdt)
        result = tau_summation * (
            jnp.dot(h2w, w3c_ref[...], preferred_element_type=f32)
            + jnp.dot(w, b3stk_ref[...], preferred_element_type=f32))
    else:
        raise NotImplementedError(algebra)

    out_ref[...] = result.astype(out_ref.dtype)        # (bb, D_pad)


# ------------------------------------------------------------------ host-side packing
def pack_params(params, algebra, tau_negation=(1.0, 1.0), compute_dtype=jnp.float32):
    w1 = jnp.asarray(params['w1'], jnp.float32)   # (M, D+1, H)
    b1 = jnp.asarray(params['b1'], jnp.float32)   # (M, 1, H)
    w2 = jnp.asarray(params['w2'], jnp.float32)   # (M, H, H)
    b2 = jnp.asarray(params['b2'], jnp.float32)   # (M, 1, H)
    w3 = jnp.asarray(params['w3'], jnp.float32)   # (M, H, D+1)
    b3 = jnp.asarray(params['b3'], jnp.float32)   # (M, 1, D+1)

    M, Din, H = w1.shape
    D = Din - 1
    MH, MD = M * H, M * D
    MH_pad = _round_up(MH, 128)
    MD_pad = _round_up(MD, 128)
    D_pad = _round_up(D, 128)

    def pad2(a, rows, cols):
        return jnp.pad(a, ((0, rows - a.shape[0]), (0, cols - a.shape[1])))

    # layer 1: x-feature rows packed to (D, M*H); timestep row split out (rank-1 term)
    w1x = pad2(jnp.transpose(w1[:, :D, :], (1, 0, 2)).reshape(D, MH), D, MH_pad)
    w1t = pad2(w1[:, D, :].reshape(1, MH), 1, MH_pad)
    b1p = pad2(b1[:, 0, :].reshape(1, MH), 1, MH_pad)

    # layer 2: block-diagonal
    w2p = pad2(block_diag(*[w2[m] for m in range(M)]), MH_pad, MH_pad)
    b2p = pad2(b2[:, 0, :].reshape(1, MH), 1, MH_pad)

    # score head: block-diagonal -> lane-packed per-model scores (B, M*D)
    w3sp = pad2(block_diag(*[w3[m, :, :D] for m in range(M)]), MH_pad, MD_pad)
    b3sp = pad2(b3[:, 0, :D].reshape(1, MD), 1, MD_pad)

    # energy head: (M*H, M); column m lives in model-m's hidden block
    w3e = jnp.zeros((M, H, M), jnp.float32)
    w3e = w3e.at[jnp.arange(M), :, jnp.arange(M)].set(w3[:, :, D])
    w3ep = pad2(w3e.reshape(MH, M), MH_pad, M)
    b3ep = b3[:, 0, D].reshape(1, M)

    # composition head: vertically stacked score weights with static coefficients folded in
    if algebra == 'negation':
        coef = jnp.array([tau_negation[0]] * (M - 1) + [-tau_negation[1]], jnp.float32)
    else:  # 'product' / 'summation' use unit coefficients
        coef = jnp.ones((M,), jnp.float32)
    w3cp = pad2((w3[:, :, :D] * coef[:, None, None]).reshape(MH, D), MH_pad, D_pad)
    b3cp = pad2((b3[:, 0, :D] * coef[:, None]).sum(axis=0, keepdims=True), 1, D_pad)

    # softmax-weight expansion (M -> packed hidden lanes) and per-model score biases
    expandp = pad2(jnp.kron(jnp.eye(M, dtype=jnp.float32),
                            jnp.ones((1, H), jnp.float32)), M, MH_pad)
    b3stkp = pad2(b3[:, 0, :D], M, D_pad)

    cdt = jnp.dtype(compute_dtype)
    tensors = (
        w1x.astype(cdt), w1t, b1p,
        w2p.astype(cdt), b2p,
        w3sp.astype(cdt), b3sp,
        w3ep.astype(cdt), b3ep,
        w3cp.astype(cdt), b3cp,
        expandp, b3stkp,
    )
    return dict(tensors=tensors, num_models=M, hidden=H, d=D,
                mh_pad=MH_pad, md_pad=MD_pad, d_pad=D_pad, compute_dtype=cdt)


# ------------------------------------------------------------------ pallas_call wrapper
def composition_forward(x, t, packed, *, algebra, tau_summation=1.0, block_b=512):
    """Returns (composed_result (B, D), per_model_scores (M, B, D))."""
    B, D = x.shape
    assert D == packed['d']
    M = packed['num_models']
    D_pad, MD_pad = packed['d_pad'], packed['md_pad']

    # batch tiling: multiple of 8 sublanes, pad B so every grid step is full
    bb = _round_up(max(8, min(int(block_b), _round_up(B, 8))), 8)
    B_pad = _round_up(B, bb)
    grid = (B_pad // bb,)

    xp = jnp.pad(x.astype(jnp.float32), ((0, B_pad - B), (0, 0)))
    tp = jnp.pad(jnp.reshape(t, (B, 1)).astype(jnp.float32), ((0, B_pad - B), (0, 0)))

    weights = packed['tensors']

    def row_spec(width):
        return pl.BlockSpec((bb, width), lambda i: (i, 0))

    # weights: constant index_map -> fetched once, stay VMEM-resident across grid steps
    const_specs = [pl.BlockSpec(a.shape, lambda i: (0, 0)) for a in weights]

    kernel = functools.partial(
        _composition_kernel,
        algebra=algebra,
        tau_summation=float(tau_summation),
        compute_dtype=packed['compute_dtype'],
    )

    out, scores = pl.pallas_call(
        kernel,
        grid=grid,
        in_specs=[row_spec(D), row_spec(1)] + const_specs,
        out_specs=(row_spec(D_pad), row_spec(MD_pad)),
        out_shape=(jax.ShapeDtypeStruct((B_pad, D_pad), jnp.float32),
                   jax.ShapeDtypeStruct((B_pad, MD_pad), jnp.float32)),
        compiler_params=pltpu.CompilerParams(
            dimension_semantics=("parallel",),      # v7x: shard batch blocks across 2 TCs
            vmem_limit_bytes=32 * 1024 * 1024),     # explicit so v7x (64 MiB) keeps 2 bufs
    )(xp, tp, *weights)

    result = out[:B, :D]
    scores = scores[:B, :M * D].reshape(B, M, D).transpose(1, 0, 2)
    return result, scores


class CachedCompositionEnergyMLPPallas:
    """JAX/Pallas port of CachedCompositionEnergyMLP over M stacked EnergyMLP sub-models."""

    def __init__(self, params, algebra='summation', tau_product=1.0,
                 tau_summation=1.0, tau_negation=(1.0, 1.0),
                 compute_dtype=jnp.float32, block_b=512):
        self.algebra = algebra
        self.tau_product = tau_product               # unused in forward (torch parity)
        self.tau_summation = tau_summation
        self.tau_negation = tuple(float(v) for v in tau_negation)
        self.block_b = block_b
        self.packed = pack_params(params, algebra, self.tau_negation, compute_dtype)
        self.cached_scores = None

    def __call__(self, x, t):
        result, scores = composition_forward(
            x, t, self.packed, algebra=self.algebra,
            tau_summation=self.tau_summation, block_b=self.block_b)
        # NOTE: storing `scores` on self is only safe for eager calls; under jax.jit use
        # `composition_forward` directly and keep the returned scores (avoids tracer leak).
        self.cached_scores = scores
        return result


# ---------------- pure-JAX reference (same math, no Pallas) for verification ----------------
def _reference(x, t, params, algebra, tau_summation, tau_negation):
    xin = jnp.concatenate([x, t[:, None].astype(x.dtype)], axis=-1)
    M = params['w1'].shape[0]
    D = x.shape[1]
    scores, energies = [], []
    for m in range(M):
        h1 = xin @ params['w1'][m] + params['b1'][m]
        h1 = h1 * jax.nn.sigmoid(h1)
        h2 = h1 @ params['w2'][m] + params['b2'][m]
        h2 = h2 * jax.nn.sigmoid(h2)
        o = h2 @ params['w3'][m] + params['b3'][m]
        scores.append(o[:, :D])
        energies.append(o[:, D:D + 1])
    v = jnp.stack(scores, 0)
    if algebra == 'product':
        out = jnp.sum(v, 0)
    elif algebra == 'summation':
        attn = jnp.stack(energies, 0)
        sm = jax.nn.softmax(-attn * tau_summation, axis=0)
        out = tau_summation * jnp.sum(v * sm, 0)
    else:
        coefs = [tau_negation[0]] * (M - 1) + [-tau_negation[1]]
        out = sum(c * v[i] for i, c in enumerate(coefs))
    return out, v


def _init_params(key, num_models, d_in, hidden, d_out):
    ks = jax.random.split(key, 6)
    din = d_in + 1  # + timestep feature
    scale = 0.5
    return dict(
        w1=scale * jax.random.normal(ks[0], (num_models, din, hidden), jnp.float32),
        b1=scale * jax.random.normal(ks[1], (num_models, 1, hidden), jnp.float32),
        w2=scale * jax.random.normal(ks[2], (num_models, hidden, hidden), jnp.float32),
        b2=scale * jax.random.normal(ks[3], (num_models, 1, hidden), jnp.float32),
        w3=scale * jax.random.normal(ks[4], (num_models, hidden, d_out + 1), jnp.float32),
        b3=scale * jax.random.normal(ks[5], (num_models, 1, d_out + 1), jnp.float32),
    )


if __name__ == "__main__":
    B, D, H, M = 24, 4, 32, 3      # batch, point dim, hidden, number of composed models
    key = jax.random.PRNGKey(0)
    kx, kt, kp = jax.random.split(key, 3)

    x = jax.random.normal(kx, (B, D), jnp.float32)
    t = jax.random.uniform(kt, (B,), jnp.float32)
    params = _init_params(kp, M, D, H, D)

    tau_s, tau_n = 2.0, (1.0, 0.5)
    ok = True

    # f32 path: tight check on all algebras (block_b=16 -> 2 grid steps, batch padded 24->32)
    for algebra in ('summation', 'product', 'negation'):
        model = CachedCompositionEnergyMLPPallas(
            params, algebra=algebra, tau_summation=tau_s, tau_negation=tau_n, block_b=16)
        out = jax.block_until_ready(model(x, t))
        ref, ref_scores = _reference(x, t, params, algebra, tau_s, tau_n)
        if out.shape != (B, D) or model.cached_scores.shape != (M, B, D):
            ok = False
        if not jnp.allclose(out, ref, atol=1e-3, rtol=1e-3):
            ok = False
        if not jnp.allclose(model.cached_scores, ref_scores, atol=1e-3, rtol=1e-3):
            ok = False

    # bf16 MXU-feed path (v6e/v7x fast path): loose sanity check against the f32 reference
    model_bf16 = CachedCompositionEnergyMLPPallas(
        params, algebra='product', tau_summation=tau_s, tau_negation=tau_n,
        compute_dtype=jnp.bfloat16, block_b=16)
    out_bf16 = jax.block_until_ready(model_bf16(x, t))
    ref_p, _ = _reference(x, t, params, 'product', tau_s, tau_n)
    scale = jnp.maximum(jnp.max(jnp.abs(ref_p)), 1.0)
    if float(jnp.max(jnp.abs(out_bf16 - ref_p)) / scale) > 0.08:
        ok = False

    if ok:
        print("KERNEL_OK")
    else:
        raise SystemExit("mismatch between Pallas kernel and reference")
</pallas_src>

<mosaic_0001>
module attributes {stable_mosaic.version = 11 : i64} {
  func.func @_composition_kernel(%arg0: i32, %arg1: memref<16x4xf32, #tpu.memory_space<vmem>>, %arg2: memref<16x1xf32, #tpu.memory_space<vmem>>, %arg3: memref<4x128xf32, #tpu.memory_space<vmem>>, %arg4: memref<1x128xf32, #tpu.memory_space<vmem>>, %arg5: memref<1x128xf32, #tpu.memory_space<vmem>>, %arg6: memref<128x128xf32, #tpu.memory_space<vmem>>, %arg7: memref<1x128xf32, #tpu.memory_space<vmem>>, %arg8: memref<128x128xf32, #tpu.memory_space<vmem>>, %arg9: memref<1x128xf32, #tpu.memory_space<vmem>>, %arg10: memref<128x3xf32, #tpu.memory_space<vmem>>, %arg11: memref<1x3xf32, #tpu.memory_space<vmem>>, %arg12: memref<128x128xf32, #tpu.memory_space<vmem>>, %arg13: memref<1x128xf32, #tpu.memory_space<vmem>>, %arg14: memref<3x128xf32, #tpu.memory_space<vmem>>, %arg15: memref<3x128xf32, #tpu.memory_space<vmem>>, %arg16: memref<16x128xf32, #tpu.memory_space<vmem>>, %arg17: memref<16x128xf32, #tpu.memory_space<vmem>>) attributes {dimension_semantics = [#tpu.dimension_semantics<parallel>], iteration_bounds = array<i64: 2>, scalar_prefetch = 0 : i64, scratch_operands = 0 : i64, tpu.core_type = #tpu.core_type<tc>, window_params = [{transform_indices = @transform_0, window_bounds = array<i64: 16, 4>}, {transform_indices = @transform_1, window_bounds = array<i64: 16, 1>}, {pipeline_mode = #tpu.pipeline_mode<synchronous>, transform_indices = @transform_2, window_bounds = array<i64: 4, 128>}, {pipeline_mode = #tpu.pipeline_mode<synchronous>, transform_indices = @transform_3, window_bounds = array<i64: 1, 128>}, {pipeline_mode = #tpu.pipeline_mode<synchronous>, transform_indices = @transform_4, window_bounds = array<i64: 1, 128>}, {pipeline_mode = #tpu.pipeline_mode<synchronous>, transform_indices = @transform_5, window_bounds = array<i64: 128, 128>}, {pipeline_mode = #tpu.pipeline_mode<synchronous>, transform_indices = @transform_6, window_bounds = array<i64: 1, 128>}, {pipeline_mode = #tpu.pipeline_mode<synchronous>, transform_indices = @transform_7, window_bounds = array<i64: 128, 128>}, {pipeline_mode = #tpu.pipeline_mode<synchronous>, transform_indices = @transform_8, window_bounds = array<i64: 1, 128>}, {pipeline_mode = #tpu.pipeline_mode<synchronous>, transform_indices = @transform_9, window_bounds = array<i64: 128, 3>}, {pipeline_mode = #tpu.pipeline_mode<synchronous>, transform_indices = @transform_10, window_bounds = array<i64: 1, 3>}, {pipeline_mode = #tpu.pipeline_mode<synchronous>, transform_indices = @transform_11, window_bounds = array<i64: 128, 128>}, {pipeline_mode = #tpu.pipeline_mode<synchronous>, transform_indices = @transform_12, window_bounds = array<i64: 1, 128>}, {pipeline_mode = #tpu.pipeline_mode<synchronous>, transform_indices = @transform_13, window_bounds = array<i64: 3, 128>}, {pipeline_mode = #tpu.pipeline_mode<synchronous>, transform_indices = @transform_14, window_bounds = array<i64: 3, 128>}, {transform_indices = @transform_15, window_bounds = array<i64: 16, 128>}, {transform_indices = @transform_16, window_bounds = array<i64: 16, 128>}]} {
    %c0 = arith.constant 0 : index
    %c0_0 = arith.constant 0 : index
    %0 = vector.load %arg1[%c0, %c0_0] : memref<16x4xf32, #tpu.memory_space<vmem>>, vector<16x4xf32>
    %c0_1 = arith.constant 0 : index
    %c0_2 = arith.constant 0 : index
    %1 = vector.load %arg2[%c0_1, %c0_2] : memref<16x1xf32, #tpu.memory_space<vmem>>, vector<16x1xf32>
    %c0_3 = arith.constant 0 : index
    %c0_4 = arith.constant 0 : index
    %2 = vector.load %arg3[%c0_3, %c0_4] : memref<4x128xf32, #tpu.memory_space<vmem>>, vector<4x128xf32>
    %cst = arith.constant dense<0.000000e+00> : vector<16x128xf32>
    %3 = tpu.matmul %0, %2, %cst {dimension_numbers = #tpu.dot_dimension_numbers<[1], [0], [0], [1], [0, 0, 1, 1], [], []>} : vector<16x4xf32>, vector<4x128xf32>, vector<16x128xf32> -> vector<16x128xf32>
    %c0_5 = arith.constant 0 : index
    %c0_6 = arith.constant 0 : index
    %4 = vector.load %arg4[%c0_5, %c0_6] : memref<1x128xf32, #tpu.memory_space<vmem>>, vector<1x128xf32>
    %5 = vector.broadcast %1 : vector<16x1xf32> to vector<16x128xf32>
    %6 = vector.broadcast %4 : vector<1x128xf32> to vector<16x128xf32>
    %7 = arith.mulf %5, %6 : vector<16x128xf32>
    %8 = arith.addf %3, %7 : vector<16x128xf32>
    %c0_7 = arith.constant 0 : index
    %c0_8 = arith.constant 0 : index
    %9 = vector.load %arg5[%c0_7, %c0_8] : memref<1x128xf32, #tpu.memory_space<vmem>>, vector<1x128xf32>
    %10 = vector.broadcast %9 : vector<1x128xf32> to vector<16x128xf32>
    %11 = arith.addf %8, %10 : vector<16x128xf32>
    %cst_9 = arith.constant 5.000000e-01 : f32
    %12 = vector.broadcast %cst_9 : f32 to vector<16x128xf32>
    %13 = arith.mulf %12, %11 : vector<16x128xf32>
    %cst_10 = arith.constant 5.000000e-01 : f32
    %14 = vector.broadcast %cst_10 : f32 to vector<16x128xf32>
    %15 = arith.mulf %14, %11 : vector<16x128xf32>
    %16 = math.tanh %15 : vector<16x128xf32>
    %cst_11 = arith.constant 1.000000e+00 : f32
    %17 = vector.broadcast %cst_11 : f32 to vector<16x128xf32>
    %18 = arith.addf %16, %17 : vector<16x128xf32>
    %19 = arith.mulf %13, %18 : vector<16x128xf32>
    %c0_12 = arith.constant 0 : index
    %c0_13 = arith.constant 0 : index
    %20 = vector.load %arg6[%c0_12, %c0_13] : memref<128x128xf32, #tpu.memory_space<vmem>>, vector<128x128xf32>
    %cst_14 = arith.constant dense<0.000000e+00> : vector<16x128xf32>
    %21 = tpu.matmul %19, %20, %cst_14 {dimension_numbers = #tpu.dot_dimension_numbers<[1], [0], [0], [1], [0, 0, 1, 1], [], []>} : vector<16x128xf32>, vector<128x128xf32>, vector<16x128xf32> -> vector<16x128xf32>
    %c0_15 = arith.constant 0 : index
    %c0_16 = arith.constant 0 : index
    %22 = vector.load %arg7[%c0_15, %c0_16] : memref<1x128xf32, #tpu.memory_space<vmem>>, vector<1x128xf32>
    %23 = vector.broadcast %22 : vector<1x128xf32> to vector<16x128xf32>
    %24 = arith.addf %21, %23 : vector<16x128xf32>
    %cst_17 = arith.constant 5.000000e-01 : f32
    %25 = vector.broadcast %cst_17 : f32 to vector<16x128xf32>
    %26 = arith.mulf %25, %24 : vector<16x128xf32>
    %cst_18 = arith.constant 5.000000e-01 : f32
    %27 = vector.broadcast %cst_18 : f32 to vector<16x128xf32>
    %28 = arith.mulf %27, %24 : vector<16x128xf32>
    %29 = math.tanh %28 : vector<16x128xf32>
    %cst_19 = arith.constant 1.000000e+00 : f32
    %30 = vector.broadcast %cst_19 : f32 to vector<16x128xf32>
    %31 = arith.addf %29, %30 : vector<16x128xf32>
    %32 = arith.mulf %26, %31 : vector<16x128xf32>
    %c0_20 = arith.constant 0 : index
    %c0_21 = arith.constant 0 : index
    %33 = vector.load %arg8[%c0_20, %c0_21] : memref<128x128xf32, #tpu.memory_space<vmem>>, vector<128x128xf32>
    %cst_22 = arith.constant dense<0.000000e+00> : vector<16x128xf32>
    %34 = tpu.matmul %32, %33, %cst_22 {dimension_numbers = #tpu.dot_dimension_numbers<[1], [0], [0], [1], [0, 0, 1, 1], [], []>} : vector<16x128xf32>, vector<128x128xf32>, vector<16x128xf32> -> vector<16x128xf32>
    %c0_23 = arith.constant 0 : index
    %c0_24 = arith.constant 0 : index
    %35 = vector.load %arg9[%c0_23, %c0_24] : memref<1x128xf32, #tpu.memory_space<vmem>>, vector<1x128xf32>
    %36 = vector.broadcast %35 : vector<1x128xf32> to vector<16x128xf32>
    %37 = arith.addf %34, %36 : vector<16x128xf32>
    %c0_25 = arith.constant 0 : index
    %c0_26 = arith.constant 0 : index
    %38 = vector.load %arg17[%c0_25, %c0_26] : memref<16x128xf32, #tpu.memory_space<vmem>>, vector<16x128xf32>
    tpu.vector_store %arg17[%c0_25, %c0_26], %37 {strides = array<i32>} : memref<16x128xf32, #tpu.memory_space<vmem>>, vector<16x128xf32>,
    %c0_27 = arith.constant 0 : index
    %c0_28 = arith.constant 0 : index
    %39 = vector.load %arg10[%c0_27, %c0_28] : memref<128x3xf32, #tpu.memory_space<vmem>>, vector<128x3xf32>
    %cst_29 = arith.constant dense<0.000000e+00> : vector<16x3xf32>
    %40 = tpu.matmul %32, %39, %cst_29 {dimension_numbers = #tpu.dot_dimension_numbers<[1], [0], [0], [1], [0, 0, 1, 1], [], []>} : vector<16x128xf32>, vector<128x3xf32>, vector<16x3xf32> -> vector<16x3xf32>
    %c0_30 = arith.constant 0 : index
    %c0_31 = arith.constant 0 : index
    %41 = vector.load %arg11[%c0_30, %c0_31] : memref<1x3xf32, #tpu.memory_space<vmem>>, vector<1x3xf32>
    %42 = vector.broadcast %41 : vector<1x3xf32> to vector<16x3xf32>
    %43 = arith.addf %40, %42 : vector<16x3xf32>
    %cst_32 = arith.constant -2.000000e+00 : f32
    %44 = vector.broadcast %cst_32 : f32 to vector<16x3xf32>
    %45 = arith.mulf %44, %43 : vector<16x3xf32>
    %cst_33 = arith.constant dense<0xFF800000> : vector<16xf32>
    %46 = vector.multi_reduction <maximumf>, %45, %cst_33 [1] : vector<16x3xf32> to vector<16xf32>
    %47 = vector.shape_cast %46 : vector<16xf32> to vector<16x1xf32>
    %48 = vector.broadcast %47 : vector<16x1xf32> to vector<16x3xf32>
    %49 = arith.subf %45, %48 : vector<16x3xf32>
    %50 = math.exp %49 : vector<16x3xf32>
    %cst_34 = arith.constant dense<0.000000e+00> : vector<16xf32>
    %51 = vector.multi_reduction <add>, %50, %cst_34 [1] : vector<16x3xf32> to vector<16xf32>
    %52 = vector.shape_cast %51 : vector<16xf32> to vector<16x1xf32>
    %53 = vector.broadcast %52 : vector<16x1xf32> to vector<16x3xf32>
    %54 = arith.divf %50, %53 : vector<16x3xf32>
    %c0_35 = arith.constant 0 : index
    %c0_36 = arith.constant 0 : index
    %55 = vector.load %arg14[%c0_35, %c0_36] : memref<3x128xf32, #tpu.memory_space<vmem>>, vector<3x128xf32>
    %cst_37 = arith.constant dense<0.000000e+00> : vector<16x128xf32>
    %56 = tpu.matmul %54, %55, %cst_37 {dimension_numbers = #tpu.dot_dimension_numbers<[1], [0], [0], [1], [0, 0, 1, 1], [], []>} : vector<16x3xf32>, vector<3x128xf32>, vector<16x128xf32> -> vector<16x128xf32>
    %57 = arith.mulf %32, %56 : vector<16x128xf32>
    %c0_38 = arith.constant 0 : index
    %c0_39 = arith.constant 0 : index
    %58 = vector.load %arg12[%c0_38, %c0_39] : memref<128x128xf32, #tpu.memory_space<vmem>>, vector<128x128xf32>
    %cst_40 = arith.constant dense<0.000000e+00> : vector<16x128xf32>
    %59 = tpu.matmul %57, %58, %cst_40 {dimension_numbers = #tpu.dot_dimension_numbers<[1], [0], [0], [1], [0, 0, 1, 1], [], []>} : vector<16x128xf32>, vector<128x128xf32>, vector<16x128xf32> -> vector<16x128xf32>
    %c0_41 = arith.constant 0 : index
    %c0_42 = arith.constant 0 : index
    %60 = vector.load %arg15[%c0_41, %c0_42] : memref<3x128xf32, #tpu.memory_space<vmem>>, vector<3x128xf32>
    %cst_43 = arith.constant dense<0.000000e+00> : vector<16x128xf32>
    %61 = tpu.matmul %54, %60, %cst_43 {dimension_numbers = #tpu.dot_dimension_numbers<[1], [0], [0], [1], [0, 0, 1, 1], [], []>} : vector<16x3xf32>, vector<3x128xf32>, vector<16x128xf32> -> vector<16x128xf32>
    %62 = arith.addf %59, %61 : vector<16x128xf32>
    %cst_44 = arith.constant 2.000000e+00 : f32
    %63 = vector.broadcast %cst_44 : f32 to vector<16x128xf32>
    %64 = arith.mulf %63, %62 : vector<16x128xf32>
    %c0_45 = arith.constant 0 : index
    %c0_46 = arith.constant 0 : index
    %65 = vector.load %arg16[%c0_45, %c0_46] : memref<16x128xf32, #tpu.memory_space<vmem>>, vector<16x128xf32>
    tpu.vector_store %arg16[%c0_45, %c0_46], %64 {strides = array<i32>} : memref<16x128xf32, #tpu.memory_space<vmem>>, vector<16x128xf32>,
    return
  }
  func.func @transform_0(%arg0: i32) -> (i32, i32) {
    %c0_i32 = arith.constant 0 : i32
    %c0_i32_0 = arith.constant 0 : i32
    return %arg0, %c0_i32 : i32, i32
  }
  func.func @transform_1(%arg0: i32) -> (i32, i32) {
    %c0_i32 = arith.constant 0 : i32
    %c0_i32_0 = arith.constant 0 : i32
    return %arg0, %c0_i32 : i32, i32
  }
  func.func @transform_2(%arg0: i32) -> (i32, i32) {
    %c0_i32 = arith.constant 0 : i32
    %c0_i32_0 = arith.constant 0 : i32
    %c0_i32_1 = arith.constant 0 : i32
    return %c0_i32, %c0_i32_0 : i32, i32
  }
  func.func @transform_3(%arg0: i32) -> (i32, i32) {
    %c0_i32 = arith.constant 0 : i32
    %c0_i32_0 = arith.constant 0 : i32
    %c0_i32_1 = arith.constant 0 : i32
    return %c0_i32, %c0_i32_0 : i32, i32
  }
  func.func @transform_4(%arg0: i32) -> (i32, i32) {
    %c0_i32 = arith.constant 0 : i32
    %c0_i32_0 = arith.constant 0 : i32
    %c0_i32_1 = arith.constant 0 : i32
    return %c0_i32, %c0_i32_0 : i32, i32
  }
  func.func @transform_5(%arg0: i32) -> (i32, i32) {
    %c0_i32 = arith.constant 0 : i32
    %c0_i32_0 = arith.constant 0 : i32
    %c0_i32_1 = arith.constant 0 : i32
    return %c0_i32, %c0_i32_0 : i32, i32
  }
  func.func @transform_6(%arg0: i32) -> (i32, i32) {
    %c0_i32 = arith.constant 0 : i32
    %c0_i32_0 = arith.constant 0 : i32
    %c0_i32_1 = arith.constant 0 : i32
    return %c0_i32, %c0_i32_0 : i32, i32
  }
  func.func @transform_7(%arg0: i32) -> (i32, i32) {
    %c0_i32 = arith.constant 0 : i32
    %c0_i32_0 = arith.constant 0 : i32
    %c0_i32_1 = arith.constant 0 : i32
    return %c0_i32, %c0_i32_0 : i32, i32
  }
  func.func @transform_8(%arg0: i32) -> (i32, i32) {
    %c0_i32 = arith.constant 0 : i32
    %c0_i32_0 = arith.constant 0 : i32
    %c0_i32_1 = arith.constant 0 : i32
    return %c0_i32, %c0_i32_0 : i32, i32
  }
  func.func @transform_9(%arg0: i32) -> (i32, i32) {
    %c0_i32 = arith.constant 0 : i32
    %c0_i32_0 = arith.constant 0 : i32
    %c0_i32_1 = arith.constant 0 : i32
    return %c0_i32, %c0_i32_0 : i32, i32
  }
  func.func @transform_10(%arg0: i32) -> (i32, i32) {
    %c0_i32 = arith.constant 0 : i32
    %c0_i32_0 = arith.constant 0 : i32
    %c0_i32_1 = arith.constant 0 : i32
    return %c0_i32, %c0_i32_0 : i32, i32
  }
  func.func @transform_11(%arg0: i32) -> (i32, i32) {
    %c0_i32 = arith.constant 0 : i32
    %c0_i32_0 = arith.constant 0 : i32
    %c0_i32_1 = arith.constant 0 : i32
    return %c0_i32, %c0_i32_0 : i32, i32
  }
  func.func @transform_12(%arg0: i32) -> (i32, i32) {
    %c0_i32 = arith.constant 0 : i32
    %c0_i32_0 = arith.constant 0 : i32
    %c0_i32_1 = arith.constant 0 : i32
    return %c0_i32, %c0_i32_0 : i32, i32
  }
  func.func @transform_13(%arg0: i32) -> (i32, i32) {
    %c0_i32 = arith.constant 0 : i32
    %c0_i32_0 = arith.constant 0 : i32
    %c0_i32_1 = arith.constant 0 : i32
    return %c0_i32, %c0_i32_0 : i32, i32
  }
  func.func @transform_14(%arg0: i32) -> (i32, i32) {
    %c0_i32 = arith.constant 0 : i32
    %c0_i32_0 = arith.constant 0 : i32
    %c0_i32_1 = arith.constant 0 : i32
    return %c0_i32, %c0_i32_0 : i32, i32
  }
  func.func @transform_15(%arg0: i32) -> (i32, i32) {
    %c0_i32 = arith.constant 0 : i32
    %c0_i32_0 = arith.constant 0 : i32
    return %arg0, %c0_i32 : i32, i32
  }
  func.func @transform_16(%arg0: i32) -> (i32, i32) {
    %c0_i32 = arith.constant 0 : i32
    %c0_i32_0 = arith.constant 0 : i32
    return %arg0, %c0_i32 : i32, i32
  }
}

</mosaic_0001>

<bundles_post_ra>
// kernel: tpu_custom_call.1
= control target key start
LH: loop header
LB: loop body
LE: loop exit
PB: predicated region body
PF: predicated region fallthrough
CT: control target
= control target key end

     0   :  { %s1807_s0 = inlined_call_operand.vmem [shape: f32[32,4], index: 0, kind: input, shape index: {}]   ;;  %s1808_s1 = inlined_call_operand.vmem [shape: f32[32,1], index: 1, kind: input, shape index: {}]   ;;  %s1809_s2 = inlined_call_operand.vmem [shape: f32[4,128], index: 2, kind: input, shape index: {}]   ;;  %s1810_s3 = inlined_call_operand.vmem [shape: f32[1,128], index: 3, kind: input, shape index: {}]   ;;  %s1811_s4 = inlined_call_operand.vmem [shape: f32[1,128], index: 4, kind: input, shape index: {}]   ;;  %s1812_s5 = inlined_call_operand.vmem [shape: f32[128,128], index: 5, kind: input, shape index: {}]   ;;  %s1813_s6 = inlined_call_operand.vmem [shape: f32[1,128], index: 6, kind: input, shape index: {}]   ;;  %s1814_s7 = inlined_call_operand.hbm [shape: f32[128,128], index: 7, kind: input, shape index: {}]   ;;  %s1815_s8 = inlined_call_operand.vmem [shape: f32[1,128], index: 8, kind: input, shape index: {}]   ;;  %s1816_s9 = inlined_call_operand.vmem [shape: f32[128,3], index: 9, kind: input, shape index: {}]   ;;  %s1817_s10 = inlined_call_operand.vmem [shape: f32[1,3], index: 10, kind: input, shape index: {}]   ;;  %s1818_s11 = inlined_call_operand.hbm [shape: f32[128,128], index: 11, kind: input, shape index: {}]   ;;  %s1819_s12 = inlined_call_operand.vmem [shape: f32[1,128], index: 12, kind: input, shape index: {}]   ;;  %s1820_s13 = inlined_call_operand.vmem [shape: f32[3,128], index: 13, kind: input, shape index: {}]   ;;  %s1821_s14 = inlined_call_operand.vmem [shape: f32[3,128], index: 14, kind: input, shape index: {}]   ;;  %s1822_s15 = inlined_call_operand.hbm [shape: f32[32,128], index: 15, kind: output, shape index: {0}]   ;;  %s1823_s16 = inlined_call_operand.hbm [shape: f32[32,128], index: 16, kind: output, shape index: {1}]  }
   0x1   :  { %1830 = sst [smem:[#allocation19_spill]] %s1807_s0 }
   0x2   :  { %1831 = sst [smem:[#allocation20_spill]] %s1808_s1 }
   0x3   :  { %1832 = sst [smem:[#allocation21_spill]] %s1814_s7 }
   0x4   :  { %22 = vsyncpa [#allocation3], 0 }
   0x5   :  { %23 = vsyncpa [#allocation6], 0 }
   0x6   :  { %24 = vsyncpa [#allocation4], 0 }
   0x7   :  { %26 = vsyncpa [#allocation4 + $0x1], 0 }
   0x8   :  { %27 = vsyncpa [#allocation9], 0 }
   0x9   :  { %29 = vsyncpa [#allocation9 + $0x1], 0  ;;  %s1520_s21 = smov 0   ;;  %s1522_s12 = smov 0  }
   0xa   :  { %s1524_s22 = smov 0   ;;  %s1526_s23 = smov 0  }
   0xb LB: > { %1833 = sst [smem:[#allocation14_spill]] %s1414_s21  ;;  %s1541_s24 = sadd.s32 4294967295, %s1426_s23   ;;  %s1426_s23 = sphi %s1526_s23, %s1847_s23   ;;  %s1422_s22 = sphi %s1524_s22, %s1849_s22   ;;  %s1418_s12 = sphi %s1522_s12, %s1851_s12   ;;  %s1414_s21 = sphi %s1520_s21, %s1850_s21  }
   0xc   : > { %1834 = sst [smem:[#allocation15_spill]] %s1422_s22  ;;  %s1123_s25 = sadd.s32 4294967294, %s1426_s23  }
   0xd   : > { %s1545_s26 = sadd.s32 1, %s1426_s23   ;;  %s367_s27 = sadd.s32 1, %s1422_s22 }
   0xe   : > { %1835 = sst [smem:[#allocation16_spill]] %s1545_s26  ;;  %s364_s28 = ssub.s32 %s1426_s23, %s1545_s26 }
   0xf   : > { %p377_p0 = scmp.ne.s32.totalorder %s1422_s22, %s1418_s12  ;;  %p365_p1 = scmp.eq.s32.totalorder %s364_s28, 0 }
  0x10   : > { %p378_p2 = scmp.eq.s32.totalorder %s1541_s24, 1  ;;  %p383_p3 = scmp.ne.s32.totalorder %s1418_s12, %s1414_s21 }
  0x11   : > { %p384_p4 = scmp.eq.s32.totalorder %s1123_s25, 1  ;;  %p1124_p7 = scmp.ge.s32.totalorder %s1426_s23, 1 }
  0x12   : > { %s1556_s29 = scalar_select %p365_p1, %s1422_s22, %s367_s27  }
  0x13   : > { %p1558_p5 = por %p378_p2, %p377_p0  ;;  %p1562_p6 = por %p384_p4, %p383_p3 }
  0x14   : > { %1836 = sst [smem:[#allocation17_spill]] %s1556_s29  ;;  %p417_p8 = scmp.lt.s32.totalorder %s1426_s23, 3 }
  0x15   : > { %s1838_s0 = scalar_select %p1562_p6, 1, 0 }
  0x16   : > { %p1198_p9 = scmp.eq.s32.totalorder %s1541_s24, 0  ;;  %p1569_p10 = pnand %p1124_p7, %p417_p8 }
  0x17   : > { %1839 = sst [smem:[#allocation18_spill]] %s1838_s0  ;;  %s1428_s25 = smov [#allocation2]  }
  0x18   : > { %s1841_s7 = sld [smem:[#allocation21_spill]]  ;;  %p1184_p11 = pneg %p1569_p10 }
  0x19   : > { %s445_s27 = sshll.u32 %s1428_s25, 4  ;;  %s466_s22 = sshll.u32 %s1818_s11, 4  ;;  %s446_s27 = int_to_ptr.vmem [resolvable:$true] %s445_s27  ;;  %s467_s22 = int_to_ptr.hbm [resolvable:$true] %s466_s22 }
  0x1a   : > { %p1185_p12 = pnand %p1198_p9, %p1184_p11  ;;  %s1429_s26 = smov 128  }
  0x1b   : > { %s1430_s0 = smov 8   ;;  %s1431_s21 = smov [#allocation5]  }
  0x1c   : > { %s468_s18 = sshll.u32 %s1431_s21, 4  ;;  %511 = sbr.rel (%p1569_p10) target bundleno = 1003 (0x3eb), region = 80  ;;  %s469_s18 = int_to_ptr.vmem [resolvable:$true] %s468_s18 }
  0x1d   : > { %1190 = dma.hbm_to_vmem [thread:$0]  (!%p1185_p12), %s467_s22, 2048, %s469_s18, [#allocation6], %s1429_s26, %s1429_s26, %s1430_s0  }
  0x1e   : > { %s443_s20 = sshll.u32 %s1841_s7, 4  ;;  %s444_s20 = int_to_ptr.hbm [resolvable:$true] %s443_s20 }
  0x1f   : > { %1187 = dma.hbm_to_vmem [thread:$0]  (!%p1185_p12), %s444_s20, 2048, %s446_s27, [#allocation3], %s1429_s26, %s1429_s26, %s1430_s0  }
  0x21   : > { %1397 = dma.done.wait (%p1198_p9), [#allocation3], 2048  }
  0x22   : > { %1399 = vsyncadd (%p1198_p9), [#allocation3], 4294965248 }
  0x23   : > { %1401 = dma.done.wait (%p1198_p9), [#allocation6], 2048  }
  0x24   : > { %1403 = vsyncadd (%p1198_p9), [#allocation6], 4294965248  ;;  %s1133_s29 = sshll.u32 %s1541_s24, 1  ;;  %v1432_v0 = vmov 0   ;;  %vm619_vm0 = vcmask 1043456   ;;  %s1842_s0 = sld [smem:[#allocation19_spill]] }
  0x25   : > { %1242 = vset.pattern.permute.xlu0 %v1432_v0  ;;  %p578_p13 = scmp.lt.s32.totalorder %s1133_s29, 3  ;;  %vm612_vm1 = vcmask 31744   ;;  %s1843_s1 = sld [smem:[#allocation20_spill]]  ;;  %v595_v1 = vld [vmem:[%s1809_s2] sm:$0xf]  ;;  %v675_v4 = vld [vmem:[%s1812_s5 + $0x78] sm:$0xff] }
  0x26   : > { %1137 = vmatpush.msk.msra.mxu0 %vm619_vm0, %v595_v1  ;;  %680 = vmatpush.msra.mxu1 %v675_v4  ;;  %v674_v5 = vld [vmem:[%s1812_s5 + $0x70] sm:$0xff]  ;;  %v673_v8 = vld [vmem:[%s1812_s5 + $0x68] sm:$0xff]  ;;  %v672_v9 = vld [vmem:[%s1812_s5 + $0x60] sm:$0xff]  ;;  %s1717_s26 = sand.u32 1, %s1418_s12   ;;  %vm801_vm2 = vcmask 23552   ;;  %vm857_vm3 = vcmask 1042432  }
  0x27   : > { %s1853_s29 = smov (!%p578_p13, %s1133_s29), 3  ;;  %v671_v10 = vld [vmem:[%s1812_s5 + $0x58] sm:$0xff]  ;;  %v670_v11 = vld [vmem:[%s1812_s5 + $0x50] sm:$0xff]  ;;  %v669_v12 = vld [vmem:[%s1812_s5 + $0x48] sm:$0xff] }
  0x28   : > { %s1134_s21 = sshll.u32 %s1853_s29, 3  ;;  %681 = vmatpush.msra.mxu1 %v674_v5  ;;  %v668_v13 = vld [vmem:[%s1812_s5 + $0x40] sm:$0xff]  ;;  %v667_v14 = vld [vmem:[%s1812_s5 + $0x38] sm:$0xff]  ;;  %v666_v15 = vld [vmem:[%s1812_s5 + $0x30] sm:$0xff] }
  0x29   : > { %v665_v16 = vld [vmem:[%s1812_s5 + $0x28] sm:$0xff]  ;;  %v664_v17 = vld [vmem:[%s1812_s5 + $0x20] sm:$0xff]  ;;  %v663_v18 = vld [vmem:[%s1812_s5 + $0x18] sm:$0xff] }
  0x2a   : > { %s581_s17 = scalar_lea.vmem %s1842_s0, %s1134_s21  ;;  %682 = vmatpush.msra.mxu1 %v673_v8  ;;  %v662_v19 = vld [vmem:[%s1812_s5 + $0x10] sm:$0xff]  ;;  %v661_v20 = vld [vmem:[%s1812_s5 + $0x8] sm:$0xff]  ;;  %v660_v21 = vld [vmem:[%s1812_s5] sm:$0xff]  ;;  %s1829_s0 = sshll.u32 %s1717_s26, 4 }
  0x2b   : > { %s587_s25 = scalar_lea.vmem %s1843_s1, %s1134_s21  ;;  %v591_v2 = vld [vmem:[%s581_s17] sm:$0xff]  ;;  %v592_v7 = vld [vmem:[%s581_s17 + $0x8] sm:$0xff]  ;;  %v726_v24 = vld [vmem:[#allocation2 + $0x78] sm:$0xff]  ;;  %s1728_s28 = scalar_lea.vmem [#allocation8], %s1829_s0 }
  0x2c   : > { %v593_v3 = vld [vmem:[%s587_s25] sm:$0xff]  ;;  %1138 = vmatmul.msk.f32.vlgmr.msra.gmra.mxu0 %vm612_vm1, %v591_v2  ;;  %v594_v6 = vld [vmem:[%s587_s25 + $0x8] sm:$0xff]  ;;  %683 = vmatpush.msra.mxu1 %v672_v9  ;;  %v771_v25 = vld [vmem:[%s1816_s9 + $0x78] sm:$0xff]  ;;  %s991_s22 = sshll.u32 %s1728_s28, 4  ;;  %s1154_s21 = sshll.u32 %s1541_s24, 4  ;;  %s992_s22 = int_to_ptr.vmem [resolvable:$true] %s991_s22 }
  0x2d   : > { %599 = vperm.xlu0 %1242, %v593_v3   ;;  %v1243_v22 = vld [vmem:[%s1810_s3] ss:$0 sm:$0xff]  ;;  %v725_v26 = vld [vmem:[#allocation2 + $0x70] sm:$0xff]  ;;  %731 = vmatpush.msra.mxu2 %v726_v24  ;;  %v724_v28 = vld [vmem:[#allocation2 + $0x68] sm:$0xff]  ;;  %s990_s20 = scalar_lea.hbm %s1823_s16, %s1154_s21  ;;  %s962_s17 = scalar_lea.sflag [#allocation9], %s1717_s26 }
  0x2e   : > { %684 = vmatpush.msra.mxu1 %v671_v10  ;;  %776 = vmatpush.msra.mxu3 %v771_v25  ;;  %v770_v27 = vld [vmem:[%s1816_s9 + $0x70] sm:$0xff]  ;;  %v769_v29 = vld [vmem:[%s1816_s9 + $0x68] sm:$0xff]  ;;  %v723_v31 = vld [vmem:[#allocation2 + $0x60] sm:$0xff]  ;;  %s993_s27 = sshll.u32 %s990_s20, 4  ;;  %s994_s27 = int_to_ptr.hbm [resolvable:$true] %s993_s27 }
  0x2f   : > { %732 = vmatpush.msra.mxu2 %v725_v26  ;;  %v768_v32 = vld [vmem:[%s1816_s9 + $0x60] sm:$0xff]  ;;  %v722_v35 = vld [vmem:[#allocation2 + $0x58] sm:$0xff]  ;;  %v721_v38 = vld [vmem:[#allocation2 + $0x50] sm:$0xff]  ;;  %s1338_s25 = sshra.s32 %s994_s27, 4  ;;  %s1339_s25 = int_to_ptr.hbm [resolvable:$true] %s1338_s25 }
  0x30   : > { %685 = vmatpush.msra.mxu1 %v670_v11  ;;  %777 = vmatpush.msra.mxu3 %v770_v27  ;;  %v1244_v33 = vld [vmem:[%s1811_s4] ss:$0 sm:$0xff]  ;;  %v767_v36 = vld [vmem:[%s1816_s9 + $0x58] sm:$0xff]  ;;  %v766_v39 = vld [vmem:[%s1816_s9 + $0x50] sm:$0xff]  ;;  %s1340_s18 = scalar_lea.hbm %s1339_s25, 16  ;;  %p1345_p3 = scmp.lt.s32.totalorder %s1339_s25, %s1823_s16 }
  0x31   : > { %733 = vmatpush.msra.mxu2 %v724_v28  ;;  %v720_v42 = vld [vmem:[#allocation2 + $0x48] sm:$0xff]  ;;  %v719_v45 = vld [vmem:[#allocation2 + $0x40] sm:$0xff]  ;;  %v718_v58 = vld [vmem:[#allocation2 + $0x38] sm:$0xff]  ;;  %p1341_p0 = scmp.ne.s32.totalorder %s1339_s25, %s1340_s18 }
  0x32   : > { %686 = vmatpush.msra.mxu1 %v669_v12  ;;  %778 = vmatpush.msra.mxu3 %v769_v29  ;;  %v765_v43 = vld [vmem:[%s1816_s9 + $0x48] sm:$0xff]  ;;  %v764_v46 = vld [vmem:[%s1816_s9 + $0x40] sm:$0xff]  ;;  %v763_v59 = vld [vmem:[%s1816_s9 + $0x38] sm:$0xff] }
  0x33   : > { %734 = vmatpush.msra.mxu2 %v723_v31  ;;  %v717_v60 = vld [vmem:[#allocation2 + $0x30] sm:$0xff]  ;;  %v716_v62 = vld [vmem:[#allocation2 + $0x28] sm:$0xff]  ;;  %v715_v0 = vld [vmem:[#allocation2 + $0x20] sm:$0xff]  ;;  %p1342_p1 = pnand %p1341_p0, %p1558_p5 }
  0x34   : > { %1139 = vmatmul.msk.f32.gmra.mxu0 %vm612_vm1, %v592_v7  ;;  %687 = vmatpush.msra.mxu1 %v668_v13  ;;  %v762_v61 = vld [vmem:[%s1816_s9 + $0x30] sm:$0xff]  ;;  %v761_v63 = vld [vmem:[%s1816_s9 + $0x28] sm:$0xff]  ;;  %v760_v1 = vld [vmem:[%s1816_s9 + $0x20] sm:$0xff] }
  0x35   : > { %604 = vperm.xlu0 %1242, %v594_v6   ;;  %779 = vmatpush.msra.mxu3 %v768_v32  ;;  %v714_v2 = vld [vmem:[#allocation2 + $0x18] sm:$0xff]  ;;  %v713_v4 = vld [vmem:[#allocation2 + $0x10] sm:$0xff]  ;;  %v712_v6 = vld [vmem:[#allocation2 + $0x8] sm:$0xff]  ;;  %p1343_p2 = pneg %p1342_p1 }
  0x36   : > { %688 = vmatpush.msra.mxu1 %v667_v14  ;;  %735 = vmatpush.msra.mxu2 %v722_v35  ;;  %v759_v3 = vld [vmem:[%s1816_s9 + $0x18] sm:$0xff]  ;;  %v758_v5 = vld [vmem:[%s1816_s9 + $0x10] sm:$0xff]  ;;  %v757_v7 = vld [vmem:[%s1816_s9 + $0x8] sm:$0xff] }
  0x37   : > { %780 = vmatpush.msra.mxu3 %v767_v36  ;;  %v711_v8 = vld [vmem:[#allocation2] sm:$0xff] }
  0x38   : > { %689 = vmatpush.msra.mxu1 %v666_v15  ;;  %736 = vmatpush.msra.mxu2 %v721_v38  ;;  %v756_v9 = vld [vmem:[%s1816_s9] sm:$0xff] }
  0x39   : > { %781 = vmatpush.msra.mxu3 %v766_v39  ;;  %v1245_v10 = vld [vmem:[%s1813_s6] ss:$0 sm:$0xff] }
  0x3a   : > { %690 = vmatpush.msra.mxu1 %v665_v16  ;;  %737 = vmatpush.msra.mxu2 %v720_v42  ;;  %v1247_v24 = vld [vmem:[%s1817_s10] ss:$0 sm:$0xff] }
  0x3b   : > { %782 = vmatpush.msra.mxu3 %v765_v43 }
  0x3c   : > { %691 = vmatpush.msra.mxu1 %v664_v17  ;;  %738 = vmatpush.msra.mxu2 %v719_v45 }
  0x3d   : > { %783 = vmatpush.msra.mxu3 %v764_v46 }
  0x3e   : > { %692 = vmatpush.msra.mxu1 %v663_v18  ;;  %739 = vmatpush.msra.mxu2 %v718_v58  ;;  %v900_v58 = vld [vmem:[#allocation5 + $0x70] sm:$0xff] }
  0x3f   : > { %784 = vmatpush.msra.mxu3 %v763_v59 }
  0x40   : > { %693 = vmatpush.msra.mxu1 %v662_v19  ;;  %740 = vmatpush.msra.mxu2 %v717_v60  ;;  %v899_v60 = vld [vmem:[#allocation5 + $0x68] sm:$0xff] }
  0x41   : > { %785 = vmatpush.msra.mxu3 %v762_v61 }
  0x42   : > { %694 = vmatpush.msra.mxu1 %v661_v20  ;;  %741 = vmatpush.msra.mxu2 %v716_v62 }
  0x43   : > { %786 = vmatpush.msra.mxu3 %v761_v63 }
  0x44   : > { %695 = vmatpush.msra.mxu1 %v660_v21  ;;  %742 = vmatpush.msra.mxu2 %v715_v0 }
  0x45   : > { %787 = vmatpush.msra.mxu3 %v760_v1  ;;  %v898_v1 = vld [vmem:[#allocation5 + $0x60] sm:$0xff] }
  0x46   : > { %743 = vmatpush.msra.mxu2 %v714_v2 }
  0x47   : > { %788 = vmatpush.msra.mxu3 %v759_v3 }
  0x48   : > { %744 = vmatpush.msra.mxu2 %v713_v4 }
  0x49   : > { %789 = vmatpush.msra.mxu3 %v758_v5  ;;  %v897_v5 = vld [vmem:[#allocation5 + $0x58] sm:$0xff] }
  0x4a   : > { %745 = vmatpush.msra.mxu2 %v712_v6 }
  0x4b   : > { %790 = vmatpush.msra.mxu3 %v757_v7 }
  0x4c   : > { %746 = vmatpush.msra.mxu2 %v711_v8 }
  0x4d   : > { %791 = vmatpush.msra.mxu3 %v756_v9  ;;  %v896_v9 = vld [vmem:[#allocation5 + $0x50] sm:$0xff] }
  0x9f   : > { %v600_v23 = vpop.permute.xlu0 %599 }
  0xa0   : > { %v610_v30 = vmul.f32 %v1243_v22, %v600_v23  ;;  %v1246_v23 = vld [vmem:[%s1815_s8] ss:$0 sm:$0xff] }
  0xa7   : > { %v605_v41 = vpop.permute.xlu0 %604 }
  0xa8   : > { %v611_v47 = vmul.f32 %v1243_v22, %v605_v41 }
  0xa9   : > { %v640_v34 = vpop.f32.mrf.mxu0 }
  0xaa   : > { %v641_v37 = vadd.f32 %v640_v34, %v610_v30 }
  0xac   : > { %v650_v40 = vadd.f32 %v1244_v33, %v641_v37 }
  0xae   : > { %v652_v44 = vmul.f32 0.5, %v650_v40 }
  0xb0   : > { %1248 = vtanh.f32 %v652_v44 }
  0xb1   : > { %v643_v48 = vpop.f32.mrf.mxu0 }
  0xb2   : > { %v644_v49 = vadd.f32 %v643_v48, %v611_v47  ;;  %v850_v47 = vld [vmem:[%s1820_s13] sm:$0x7] }
  0xb3   : > { %1140 = vmatpush.msk.msrb.mxu0 %vm857_vm3, %v850_v47  ;;  %v902_v48 = vld [vmem:[%s1821_s14] sm:$0x7] }
  0xb4   : > { %v651_v50 = vadd.f32 %v1244_v33, %v644_v49 }
  0xb5   : > { %1143 = vmatpush.msk.msra.mxu0 %vm857_vm3, %v902_v48 }
  0xb6   : > { %v1249_v51 = vpop.eup %1248  ;;  %v653_v52 = vmul.f32 0.5, %v651_v50 }
  0xb7   : > { %v656_v53 = vadd.f32 1.0, %v1249_v51 }
  0xb8   : > { %1250 = vtanh.f32 %v653_v52 }
  0xb9   : > { %v658_v54 = vmul.f32 %v656_v53, %v652_v44 }
  0xbb   : > { %696 = vmatmul.f32.vlgmr.msra.gmra.mxu1 %v658_v54 }
  0xbe   : > { %v1251_v55 = vpop.eup %1250 }
  0xbf   : > { %v657_v56 = vadd.f32 1.0, %v1251_v55 }
  0xc1   : > { %v659_v57 = vmul.f32 %v657_v56, %v653_v52 }
  0xc3   : > { %699 = vmatmul.f32.gmra.mxu1 %v659_v57  ;;  %v901_v57 = vld [vmem:[#allocation5 + $0x78] sm:$0xff] }
  0xc4   : > { %929 = vmatpush.msrb.mxu1 %v901_v57  ;;  %1156 = vmatpush.msrb.mxu2 %v901_v57 }
  0xc6   : > { %930 = vmatpush.msrb.mxu1 %v900_v58  ;;  %1157 = vmatpush.msrb.mxu2 %v900_v58 }
  0xc8   : > { %931 = vmatpush.msrb.mxu1 %v899_v60  ;;  %1158 = vmatpush.msrb.mxu2 %v899_v60 }
  0xca   : > { %932 = vmatpush.msrb.mxu1 %v898_v1  ;;  %1159 = vmatpush.msrb.mxu2 %v898_v1 }
  0xcc   : > { %933 = vmatpush.msrb.mxu1 %v897_v5  ;;  %1160 = vmatpush.msrb.mxu2 %v897_v5 }
  0xce   : > { %934 = vmatpush.msrb.mxu1 %v896_v9  ;;  %1161 = vmatpush.msrb.mxu2 %v896_v9 }
 0x138   : > { %v697_v11 = vpop.f32.mrf.mxu1 }
 0x139   : > { %v698_v12 = vadd.f32 %v1245_v10, %v697_v11  ;;  %v895_v11 = vld [vmem:[#allocation5 + $0x48] sm:$0xff] }
 0x13a   : > { %935 = vmatpush.msrb.mxu1 %v895_v11  ;;  %1162 = vmatpush.msrb.mxu2 %v895_v11 }
 0x13b   : > { %v703_v13 = vmul.f32 0.5, %v698_v12 }
 0x13d   : > { %1252 = vtanh.f32 %v703_v13 }
 0x140   : > { %v700_v14 = vpop.f32.mrf.mxu1 }
 0x141   : > { %v701_v15 = vadd.f32 %v1245_v10, %v700_v14  ;;  %v894_v14 = vld [vmem:[#allocation5 + $0x40] sm:$0xff] }
 0x142   : > { %936 = vmatpush.msrb.mxu1 %v894_v14  ;;  %1163 = vmatpush.msrb.mxu2 %v894_v14 }
 0x143   : > { %v1253_v16 = vpop.eup %1252  ;;  %v704_v17 = vmul.f32 0.5, %v701_v15 }
 0x144   : > { %v707_v18 = vadd.f32 1.0, %v1253_v16 }
 0x145   : > { %1254 = vtanh.f32 %v704_v17 }
 0x146   : > { %v1708_v19 = vmul.f32 %v707_v18, %v703_v13  ;;  %v892_v18 = vld [vmem:[#allocation5 + $0x30] sm:$0xff] }
 0x148   : > { %747 = vmatmul.f32.vlgmr.msra.gmra.mxu2 %v1708_v19  ;;  %792 = vmatmul.f32.vlgmr.msra.gmra.mxu3 %v1708_v19 }
 0x14b   : > { %v1255_v20 = vpop.eup %1254 }
 0x14c   : > { %v708_v21 = vadd.f32 1.0, %v1255_v20  ;;  %v891_v20 = vld [vmem:[#allocation5 + $0x28] sm:$0xff] }
 0x14e   : > { %v1712_v22 = vmul.f32 %v708_v21, %v704_v17  ;;  %v893_v17 = vld [vmem:[#allocation5 + $0x38] sm:$0xff]  ;;  %v890_v21 = vld [vmem:[#allocation5 + $0x20] sm:$0xff] }
 0x14f   : > { %937 = vmatpush.msrb.mxu1 %v893_v17  ;;  %1164 = vmatpush.msrb.mxu2 %v893_v17 }
 0x150   : > { %750 = vmatmul.f32.gmra.mxu2 %v1712_v22  ;;  %795 = vmatmul.f32.gmra.mxu3 %v1712_v22 }
 0x151   : > { %938 = vmatpush.msrb.mxu1 %v892_v18  ;;  %1165 = vmatpush.msrb.mxu2 %v892_v18 }
 0x153   : > { %939 = vmatpush.msrb.mxu1 %v891_v20  ;;  %1166 = vmatpush.msrb.mxu2 %v891_v20 }
 0x155   : > { %940 = vmatpush.msrb.mxu1 %v890_v21  ;;  %1167 = vmatpush.msrb.mxu2 %v890_v21 }
 0x1cb   : > { %v748_v25 = vpop.f32.mrf.mxu2  ;;  %v793_v26 = vpop.f32.mrf.mxu3 }
 0x1cc   : > { %v749_v27 = vadd.f32 %v1246_v23, %v748_v25  ;;  %v794_v28 = vadd.f32 %v1247_v24, %v793_v26  ;;  %v887_v25 = vld [vmem:[#allocation5 + $0x8] sm:$0xff]  ;;  %v886_v26 = vld [vmem:[#allocation5] sm:$0xff] }
 0x1ce   : > { %754 = vst [vmem:[%s1728_s28] sm:$0xff] %v749_v27  ;;  %v799_v29 = vmul.f32 -2.0, %v794_v28 }
 0x1d0   : > { %v802_v30 = vsel %vm801_vm2, %v799_v29, -inf }
 0x1d1   : > { %803 = vmax.xlane.f32.xlu1 %v802_v30 }
 0x1d3   : > { %v751_v31 = vpop.f32.mrf.mxu2  ;;  %v796_v32 = vpop.f32.mrf.mxu3 }
 0x1d4   : > { %v752_v33 = vadd.f32 %v1246_v23, %v751_v31  ;;  %v797_v34 = vadd.f32 %v1247_v24, %v796_v32  ;;  %v889_v23 = vld [vmem:[#allocation5 + $0x18] sm:$0xff]  ;;  %v888_v24 = vld [vmem:[#allocation5 + $0x10] sm:$0xff] }
 0x1d5   : > { %941 = vmatpush.msrb.mxu1 %v889_v23  ;;  %1168 = vmatpush.msrb.mxu2 %v889_v23 }
 0x1d6   : > { %755 = vst [vmem:[%s1728_s28 + $0x8] sm:$0xff] %v752_v33  ;;  %v800_v35 = vmul.f32 -2.0, %v797_v34  ;;  %s1344_s28 = scalar_lea.hbm %s1823_s16, 32 }
 0x1d7   : > { %942 = vmatpush.msrb.mxu1 %v888_v24  ;;  %1169 = vmatpush.msrb.mxu2 %v888_v24  ;;  %p1346_p4 = scmp.lt.s32.totalorder %s1344_s28, %s1340_s18 }
 0x1d8   : > { %v805_v36 = vsel %vm801_vm2, %v800_v35, -inf }
 0x1d9   : > { %806 = vmax.xlane.f32.xlu1 %v805_v36  ;;  %943 = vmatpush.msrb.mxu1 %v887_v25  ;;  %p1347_p7 = por %p1346_p4, %p1345_p3 }
 0x1da   : > { %1170 = vmatpush.msrb.mxu2 %v887_v25 }
 0x1db   : > { %944 = vmatpush.msrb.mxu1 %v886_v26  ;;  %p1348_p8 = pnand %p1347_p7, %p1343_p2 }
 0x1dc   : > { %1171 = vmatpush.msrb.mxu2 %v886_v26 }
 0x244   : > { %v804_v37 = vpop.xlane.xlu1 %803 }
 0x245   : > { %v808_v38 = vsub.f32 %v799_v29, %v804_v37 }
 0x247   : > { %v810_v39 = vmul.f32 1.442695, %v808_v38 }
 0x249   : > { %1256 = vpow2.f32 %v810_v39 }
 0x24c   : > { %v807_v40 = vpop.xlane.xlu1 %806 }
 0x24d   : > { %v809_v41 = vsub.f32 %v800_v35, %v807_v40 }
 0x24f   : > { %v1257_v42 = vpop.eup %1256  ;;  %v812_v43 = vmul.f32 1.442695, %v809_v41 }
 0x250   : > { %v814_v44 = vsel %vm801_vm2, %v1257_v42, 0.0 }
 0x251   : > { %1258 = vpow2.f32 %v812_v43  ;;  %815 = vadd.xlane.f32.xlu2 %v814_v44 }
 0x257   : > { %v1735_v45 = vpop.eup %1258 }
 0x258   : > { %v817_v46 = vsel %vm801_vm2, %v1735_v45, 0.0 }
 0x259   : > { %818 = vadd.xlane.f32.xlu2 %v817_v46 }
 0x2c4   : > { %v816_v49 = vpop.xlane.xlu2 %815 }
 0x2c5   : > { %1260 = vrcp.f32 %v816_v49  ;;  %v831_v54 = vand.u32 2147483648, %v816_v49  ;;  %v829_v56 = vand.u32 2147483647, %v816_v49  ;;  %vm825_vm5 = vweird.f32 %v816_v49 }
 0x2c7   : > { %v832_v62 = vor.u32 1.1754944e-38, %v831_v54  ;;  %vm830_vm7 = vcmp.eq.f32.partialorder %v829_v56, 8.507059e+37 }
 0x2cb   : > { %v1261_v50 = vpop.eup %1260 }
 0x2cc   : > { %v821_v51 = vmul.f32 %v1261_v50, %v816_v49  ;;  %v819_v52 = vpop.xlane.xlu2 %818  ;;  %vm826_vm4 = vweird.f32 %v1261_v50 }
 0x2cd   : > { %1262 = vrcp.f32 %v819_v52  ;;  %vm827_vm6 = vmor %vm825_vm5, %vm826_vm4  ;;  %v846_v6 = vand.u32 2147483648, %v819_v52  ;;  %v844_v8 = vand.u32 2147483647, %v819_v52  ;;  %vm840_vm9 = vweird.f32 %v819_v52 }
 0x2ce   : > { %v822_v53 = vsub.f32 1.0, %v821_v51 }
 0x2cf   : > { %v847_v12 = vor.u32 1.1754944e-38, %v846_v6  ;;  %vm845_vm11 = vcmp.eq.f32.partialorder %v844_v8, 8.507059e+37 }
 0x2d0   : > { %v823_v55 = vmul.f32 %v1261_v50, %v822_v53 }
 0x2d2   : > { %v824_v59 = vadd.f32 %v1261_v50, %v823_v55 }
 0x2d3   : > { %v1263_v61 = vpop.eup %1262 }
 0x2d4   : > { %v836_v63 = vmul.f32 %v1263_v61, %v819_v52  ;;  %v828_v0 = vsel %vm827_vm6, %v1261_v50, %v824_v59  ;;  %vm841_vm8 = vweird.f32 %v1263_v61 }
 0x2d5   : > { %v833_v2 = vsel %vm830_vm7, %v832_v62, %v828_v0  ;;  %vm842_vm10 = vmor %vm840_vm9, %vm841_vm8 }
 0x2d6   : > { %v837_v3 = vsub.f32 1.0, %v836_v63  ;;  %v834_v4 = vmul.f32 %v1257_v42, %v833_v2 }
 0x2d8   : > { %v838_v7 = vmul.f32 %v1263_v61, %v837_v3  ;;  %1141 = vmatmul.msk.f32.vlgmr.msrb.gmra.mxu0 %vm801_vm2, %v834_v4 }
 0x2da   : > { %v839_v10 = vadd.f32 %v1263_v61, %v838_v7 }
 0x2dc   : > { %v843_v13 = vsel %vm842_vm10, %v1263_v61, %v839_v10 }
 0x2dd   : > { %v848_v15 = vsel %vm845_vm11, %v847_v12, %v843_v13 }
 0x2de   : > { %v849_v16 = vmul.f32 %v1735_v45, %v848_v15 }
 0x2e0   : > { %1142 = vmatmul.msk.f32.gmra.mxu0 %vm801_vm2, %v849_v16 }
 0x2e8   : > { %1144 = vmatmul.msk.f32.vlgmr.msra.gmra.mxu0 %vm801_vm2, %v834_v4 }
 0x2f0   : > { %1145 = vmatmul.msk.f32.gmra.mxu0 %vm801_vm2, %v849_v16 }
 0x355   : > { %v878_v27 = vpop.f32.mrf.mxu0 }
 0x356   : > { %v884_v28 = vmul.f32 %v878_v27, %v1708_v19 }
 0x358   : > { %945 = vmatmul.f32.vlgmr.msrb.gmra.mxu1 %v884_v28 }
 0x35d   : > { %v881_v29 = vpop.f32.mrf.mxu0 }
 0x35e   : > { %v885_v30 = vmul.f32 %v881_v29, %v1712_v22 }
 0x360   : > { %948 = vmatmul.f32.vlgmr.msrb.gmra.mxu2 %v885_v30 }
 0x361   : > { %1351 = shalt.err (!%p1348_p8)
}
 0x362   : > { %s1433_s19 = smov 128   ;;  %s1434_s7 = smov 8  }
 0x363   : > { %1181 = dma.vmem_to_hbm [thread:$0]  (%p1558_p5), %s992_s22, 256, %s994_s27, %s962_s17, %s1433_s19, %s1433_s19, %s1434_s7  }
 0x364   : > { %s1844_s1 = sshll.u32 %s1717_s26, 4  ;;  %s973_s18 = scalar_lea.hbm %s1822_s15, %s1154_s21 }
 0x365   : > { %v923_v19 = vpop.f32.mrf.mxu0  ;;  %s569_s0 = scalar_lea.vmem [#allocation7], %s1844_s1  ;;  %s976_s28 = sshll.u32 %s973_s18, 4  ;;  %s977_s28 = int_to_ptr.hbm [resolvable:$true] %s976_s28 }
 0x366   : > { %s974_s29 = sshll.u32 %s569_s0, 4  ;;  %s957_s22 = scalar_lea.sflag [#allocation4], %s1717_s26  ;;  %s975_s29 = int_to_ptr.vmem [resolvable:$true] %s974_s29 }
 0x367   : > { %s1366_s27 = sshra.s32 %s977_s28, 4  ;;  %s1372_s21 = scalar_lea.hbm %s1822_s15, 32  ;;  %s1367_s27 = int_to_ptr.hbm [resolvable:$true] %s1366_s27 }
 0x368   : > { %s1368_s17 = scalar_lea.hbm %s1367_s27, 16  ;;  %p1373_p12 = scmp.lt.s32.totalorder %s1367_s27, %s1822_s15 }
 0x369   : > { %p1369_p9 = scmp.ne.s32.totalorder %s1367_s27, %s1368_s17  ;;  %p1374_p13 = scmp.lt.s32.totalorder %s1372_s21, %s1368_s17 }
 0x36b   : > { %p1370_p10 = pnand %p1369_p9, %p1558_p5  ;;  %p1375_p0 = por %p1374_p13, %p1373_p12 }
 0x36d   : > { %v926_v33 = vpop.f32.mrf.mxu0  ;;  %p1371_p11 = pneg %p1370_p10 }
 0x36f   : > { %p1376_p1 = pnand %p1375_p0, %p1371_p11 }
 0x3d5   : > { %v946_v22 = vpop.f32.mrf.mxu1 }
 0x3d6   : > { %v947_v31 = vadd.f32 %v946_v22, %v923_v19 }
 0x3d8   : > { %v952_v32 = vmul.f32 2.0, %v947_v31 }
 0x3da   : > { %954 = vst [vmem:[%s569_s0] sm:$0xff] %v952_v32 }
 0x3e3   : > { %v949_v34 = vpop.f32.mrf.mxu2 }
 0x3e4   : > { %v950_v35 = vadd.f32 %v949_v34, %v926_v33 }
 0x3e6   : > { %v953_v36 = vmul.f32 2.0, %v950_v35 }
 0x3e8   : > { %955 = vst [vmem:[%s569_s0 + $0x8] sm:$0xff] %v953_v36 }
 0x3e9   : > { %1379 = shalt.err (!%p1376_p1)
}
 0x3ea   : > { %1180 = dma.vmem_to_hbm [thread:$0]  (%p1558_p5), %s975_s29, 256, %s977_s28, %s957_s22, %s1433_s19, %s1433_s19, %s1434_s7  }
 0x3eb PF: > { %s1845_s26 = sld [smem:[#allocation14_spill]]  ;;  %p1202_p2 = scmp.ge.s32.totalorder %s1426_s23, 2 }
 0x3ed   : > { %p1192_p3 = pnand %p1202_p2, %p1562_p6 }
 0x3ef   : > { %p1193_p4 = pneg %p1192_p3 }
 0x3f1   : > { %s1008_s18 = sand.u32 1, %s1845_s26  }
 0x3f2   : > { %s1009_s27 = scalar_lea.sflag [#allocation4], %s1008_s18 }
 0x3f3   : > { %1405 = dma.done.wait (%p1193_p4), %s1009_s27, 256  }
 0x3f4   : > { %1407 = vsyncadd (%p1193_p4), %s1009_s27, 4294967040  ;;  %s1019_s17 = scalar_lea.sflag [#allocation9], %s1008_s18 }
 0x3f5   : > { %1409 = dma.done.wait (%p1193_p4), %s1019_s17, 256  }
 0x3f6   : > { %1411 = vsyncadd (%p1193_p4), %s1019_s17, 4294967040  ;;  %s1847_s23 = sld [smem:[#allocation16_spill]]  ;;  %s1850_s21 = smov %s1418_s12 }
 0x3f7   : > { %s1848_s30 = sld [smem:[#allocation15_spill]] }
 0x3f8   : > { %s1849_s22 = sld [smem:[#allocation17_spill]] }
 0x3fc   : > { %p32_p5 = scmp.ge.s32.totalorder %s1847_s23, 4  }
 0x3fd   : > { %s1851_s12 = smov %s1848_s30 }
 0x3fe   :  { %34 = sbr.rel (!%p32_p5) target bundleno = 11 (0xb), region = 144 }
 0x403   :  { %1025 = vsyncpa [#allocation3], 1 }
 0x404   :  { %1027 = vsyncpa [#allocation3 + $0x1], 1 }
 0x405   :  { %1028 = vsyncpa [#allocation6], 1 }
 0x406   :  { %1029 = vsyncpa [#allocation4], 1 }
 0x407   :  { %1031 = vsyncpa [#allocation4 + $0x1], 1 }
 0x408   :  { %1032 = vsyncpa [#allocation9], 1 }
 0x409   :  { %1034 = vsyncpa [#allocation9 + $0x1], 1 }

</bundles_post_ra>
